<compile_context>
chip_gen: v7x
topology: tpu7x:2x2x1
jax: 0.10.0
libtpu: 0.0.40
codegen_flags: <defaults>
</compile_context>

<pallas_src>
import math
import numpy as np
import jax
import jax.numpy as jnp
from jax.experimental import pallas as pl
from jax.experimental.pallas import tpu as pltpu


# ---------------------------------------------------------------------------
# weight-only / trace-time helpers
# ---------------------------------------------------------------------------
def _crop_or_pad(a, axis, size):
    """numpy.fft-style crop (truncate) or zero-pad at the end of `axis`."""
    cur = a.shape[axis]
    if cur == size:
        return a
    if cur > size:
        idx = [slice(None)] * a.ndim
        idx[axis] = slice(0, size)
        return a[tuple(idx)]
    pads = [(0, 0)] * a.ndim
    pads[axis] = (0, size - cur)
    return jnp.pad(a, pads)


def _idft_mats(n):
    """(cos, sin) matrices of the orthonormal inverse DFT of size n (symmetric)."""
    k = np.arange(n)
    ang = 2.0 * np.pi * np.outer(k, k) / n
    s = 1.0 / np.sqrt(n)
    return (np.cos(ang) * s).astype(np.float32), (np.sin(ang) * s).astype(np.float32)


def _irfft_mats(dh, d):
    """(Cr, Ci) such that irfft(v, n=d, norm='ortho') == vr @ Cr + vi @ Ci."""
    k = np.arange(dh)
    n = np.arange(d)
    ang = 2.0 * np.pi * np.outer(k, n) / d
    alpha = np.full((dh, 1), 2.0)
    alpha[0, 0] = 1.0                       # DC bin is not doubled
    if d % 2 == 0 and dh == d // 2 + 1:
        alpha[-1, 0] = 1.0                  # Nyquist bin is not doubled
    s = alpha / np.sqrt(d)
    return (np.cos(ang) * s).astype(np.float32), (-np.sin(ang) * s).astype(np.float32)


def _channel_tile(dim, h, row_cap=512):
    """Channels per grid step: ~row_cap MXU rows per step, >=2 steps when possible,
    and (tc*h) sublane-aligned unless the block covers the whole channel axis."""
    dim, h = int(dim), int(h)
    tc = max(1, min(dim, row_cap // max(h, 1)))
    if tc >= dim and dim >= 2:
        tc = -(-dim // 2)                   # >=2 parallel steps -> v7x dual-TC sharding
    if tc < dim:
        unit = 8 // math.gcd(h, 8)          # make tc*h a multiple of 8 (sublane tile)
        tc = max(unit, (tc // unit) * unit)
        if tc >= dim:
            tc = dim
    return tc


def _col_tile(wd, nd, vmem_cap_bytes=4 << 20):
    """Column tile of the fused (2*wd, nd) matrix: full extent when it comfortably
    fits in VMEM, otherwise a multiple of 128 keeping one block under the cap."""
    wd, nd = int(wd), int(nd)
    if 2 * wd * nd * 4 <= vmem_cap_bytes:
        return nd
    tn = (vmem_cap_bytes // (2 * wd * 4)) // 128 * 128
    return int(min(max(tn, 128), nd))


# ---------------------------------------------------------------------------
# fused kernel: block-complex IDFT along H, then fused IDFT-W + irfft-D matmul
# ---------------------------------------------------------------------------
def _ffparser_fused_kernel(x_ref, a_ref, m_ref, o_ref, y_ref):
    # x_ref: (tc, 2H, 2*W*Dh)  per-channel packed spectrum [[Xr, Xi], [Xi, -Xr]]
    # a_ref: (H, 2H)           block-complex IDFT-H matrix [Er | -Ei]
    # m_ref: (2*W*Dh, tn)      fused IDFT-W + one-sided irfft-D matrix (column tile)
    # o_ref: (tc*H, tn)        lane-dense real output rows (row = (channel, h))
    # y_ref: (tc*H, 2*W*Dh)    VMEM scratch: spatial-H rows, lanes=[real|imag](w,dh)
    tc = x_ref.shape[0]
    h = a_ref.shape[0]

    @pl.when(pl.program_id(1) == 0)          # y only depends on the channel group
    def _():
        a = a_ref[...]                                        # (H, 2H), tiny, resident
        for c in range(tc):                                   # tc static & small
            y_ref[pl.ds(c * h, h), :] = jnp.dot(
                a, x_ref[c], preferred_element_type=jnp.float32)

    o_ref[...] = jnp.dot(y_ref[...], m_ref[...],
                         preferred_element_type=jnp.float32).astype(o_ref.dtype)


# ---------------------------------------------------------------------------
# wrappers
# ---------------------------------------------------------------------------
def ffparser_n_irfft_weight(complex_weight, H, W, D):
    """irfftn(view_as_complex(complex_weight), s=(H, W, D), axes=(1, 2, 3), 'ortho').

    Depends only on the weight and the target spatial shape -- callers should jit /
    cache this per weight update instead of recomputing it every forward step.
    """
    f32 = jnp.float32
    dim = complex_weight.shape[0]
    Dh = D // 2 + 1
    WD = W * Dh
    ND = W * D

    # --- crop/pad the stored spectrum to the one-sided target grid (H, W, Dh) ----
    wr = complex_weight[..., 0]
    wi = complex_weight[..., 1]
    for axis, size in ((1, H), (2, W), (3, Dh)):
        wr = _crop_or_pad(wr, axis, size)
        wi = _crop_or_pad(wi, axis, size)
    wr = wr.astype(f32).reshape(dim, H, WD)
    wi = wi.astype(f32).reshape(dim, H, WD)

    # per-channel packed RHS  [[Xr, Xi], [Xi, -Xr]]  -> (dim, 2H, 2*W*Dh)
    xa = jnp.concatenate(
        [jnp.concatenate([wr, wi], axis=-1),
         jnp.concatenate([wi, -wr], axis=-1)], axis=1)

    # --- constant matrices (numpy at trace time; folded per (H, W, D)) -----------
    ehr, ehi = _idft_mats(H)
    a_mat = jnp.asarray(np.concatenate([ehr, -ehi], axis=1))          # (H, 2H)

    ewr, ewi = _idft_mats(W)
    cr, ci = _irfft_mats(Dh, D)
    mr = np.einsum('wx,kd->wkxd', ewr, cr) + np.einsum('wx,kd->wkxd', ewi, ci)
    mi = np.einsum('wx,kd->wkxd', ewr, ci) - np.einsum('wx,kd->wkxd', ewi, cr)
    m_mat = jnp.asarray(np.concatenate(
        [mr.reshape(WD, ND), mi.reshape(WD, ND)],
        axis=0).astype(np.float32))                                   # (2*W*Dh, W*D)

    # --- tiling -------------------------------------------------------------------
    tc = _channel_tile(dim, H)
    tn = _col_tile(WD, ND)
    grid = (pl.cdiv(dim, tc), pl.cdiv(ND, tn))
    # TODO(synk): for spatial sizes >~48 the fused matrix is re-streamed from HBM per
    # channel group once tn < W*D; switch to a separable two-matmul path there.

    out = pl.pallas_call(
        _ffparser_fused_kernel,
        out_shape=jax.ShapeDtypeStruct((dim * H, ND), f32),
        grid_spec=pltpu.PrefetchScalarGridSpec(
            num_scalar_prefetch=0,
            grid=grid,
            in_specs=[
                pl.BlockSpec((tc, 2 * H, 2 * WD), lambda c, n: (c, 0, 0)),
                pl.BlockSpec((H, 2 * H), lambda c, n: (0, 0)),
                pl.BlockSpec((2 * WD, tn), lambda c, n: (0, n)),
            ],
            out_specs=pl.BlockSpec((tc * H, tn), lambda c, n: (c, n)),
            scratch_shapes=[pltpu.VMEM((tc * H, 2 * WD), f32)],
        ),
        compiler_params=pltpu.CompilerParams(
            dimension_semantics=("parallel", "arbitrary")),
    )(xa, a_mat, m_mat)

    return out.reshape(dim, H, W, D)         # free reshape (contiguous split)


def ffparser_n_forward(x, complex_weight, spatial_size=None):
    """Pallas/TPU forward of FFParser_n: the rfftn of `x` is dead code in the module
    (`x = weight` overwrites it), so the output is irfftn(weight) at x's spatial shape."""
    B, C, H, W, D = x.shape
    del spatial_size                          # computed but unused in the reference module
    return ffparser_n_irfft_weight(complex_weight, H, W, D)


# ---------------------------------------------------------------------------
# demo / correctness check
# ---------------------------------------------------------------------------
if __name__ == "__main__":
    key = jax.random.PRNGKey(0)
    # module-consistent small shapes: x is (B, C, H, W, D); weight is (dim, h, w, d, 2)
    B, C, H, W, D = 2, 4, 16, 16, 16
    dim, wh, ww, wd = 4, 12, 20, 8            # exercises zero-pad (h), crop (w), pad (d)

    kx, kw = jax.random.split(key)
    x = jax.random.normal(kx, (B, C, H, W, D), dtype=jnp.float32)
    complex_weight = (jax.random.normal(kw, (dim, wh, ww, wd, 2), dtype=jnp.float32)
                      * jnp.float32(0.02))

    fwd = jax.jit(ffparser_n_forward)
    out = jax.block_until_ready(fwd(x, complex_weight))
    assert out.shape == (dim, H, W, D)

    # reference: exactly what the PyTorch forward computes (numpy FFT, fp64)
    w_np = np.asarray(complex_weight, dtype=np.float64)
    w_c = w_np[..., 0] + 1j * w_np[..., 1]
    ref = np.fft.irfftn(w_c, s=(H, W, D), axes=(1, 2, 3), norm='ortho')

    err = float(np.max(np.abs(np.asarray(out, dtype=np.float64) - ref)))
    assert err < 1e-3, f"max abs error {err}"
    print("KERNEL_OK")
</pallas_src>

<mosaic_0001>
module attributes {stable_mosaic.version = 11 : i64} {
  func.func @_ffparser_fused_kernel(%arg0: i32, %arg1: i32, %arg2: memref<2x32x288xf32, #tpu.memory_space<vmem>>, %arg3: memref<16x32xf32, #tpu.memory_space<vmem>>, %arg4: memref<288x256xf32, #tpu.memory_space<vmem>>, %arg5: memref<32x256xf32, #tpu.memory_space<vmem>>, %arg6: memref<32x288xf32, #tpu.memory_space<vmem>>) attributes {dimension_semantics = [#tpu.dimension_semantics<parallel>, #tpu.dimension_semantics<arbitrary>], iteration_bounds = array<i64: 2, 1>, scalar_prefetch = 0 : i64, scratch_operands = 1 : i64, tpu.core_type = #tpu.core_type<tc>, window_params = [{transform_indices = @transform_0, window_bounds = array<i64: 2, 32, 288>}, {pipeline_mode = #tpu.pipeline_mode<synchronous>, transform_indices = @transform_1, window_bounds = array<i64: 16, 32>}, {transform_indices = @transform_2, window_bounds = array<i64: 288, 256>}, {transform_indices = @transform_3, window_bounds = array<i64: 32, 256>}]} {
    %c0_i32 = arith.constant 0 : i32
    %0 = arith.cmpi eq, %arg1, %c0_i32 : i32
    %1 = arith.extui %0 : i1 to i32
    %c0_i32_0 = arith.constant 0 : i32
    %2 = arith.cmpi ne, %1, %c0_i32_0 : i32
    scf.if %2 {
      %c0_6 = arith.constant 0 : index
      %c0_7 = arith.constant 0 : index
      %7 = vector.load %arg3[%c0_6, %c0_7] : memref<16x32xf32, #tpu.memory_space<vmem>>, vector<16x32xf32>
      %c0_8 = arith.constant 0 : index
      %c0_9 = arith.constant 0 : index
      %c0_10 = arith.constant 0 : index
      %8 = vector.load %arg2[%c0_8, %c0_9, %c0_10] : memref<2x32x288xf32, #tpu.memory_space<vmem>>, vector<1x32x288xf32>
      %9 = vector.shape_cast %8 : vector<1x32x288xf32> to vector<32x288xf32>
      %cst_11 = arith.constant dense<0.000000e+00> : vector<16x288xf32>
      %10 = tpu.matmul %7, %9, %cst_11 {dimension_numbers = #tpu.dot_dimension_numbers<[1], [0], [0], [1], [0, 0, 1, 1], [], []>} : vector<16x32xf32>, vector<32x288xf32>, vector<16x288xf32> -> vector<16x288xf32>
      %c0_12 = arith.constant 0 : index
      %c0_13 = arith.constant 0 : index
      %11 = vector.load %arg6[%c0_12, %c0_13] : memref<32x288xf32, #tpu.memory_space<vmem>>, vector<16x288xf32>
      tpu.vector_store %arg6[%c0_12, %c0_13], %10 {strides = array<i32>} : memref<32x288xf32, #tpu.memory_space<vmem>>, vector<16x288xf32>,
      %c1 = arith.constant 1 : index
      %c0_14 = arith.constant 0 : index
      %c0_15 = arith.constant 0 : index
      %12 = vector.load %arg2[%c1, %c0_14, %c0_15] : memref<2x32x288xf32, #tpu.memory_space<vmem>>, vector<1x32x288xf32>
      %13 = vector.shape_cast %12 : vector<1x32x288xf32> to vector<32x288xf32>
      %cst_16 = arith.constant dense<0.000000e+00> : vector<16x288xf32>
      %14 = tpu.matmul %7, %13, %cst_16 {dimension_numbers = #tpu.dot_dimension_numbers<[1], [0], [0], [1], [0, 0, 1, 1], [], []>} : vector<16x32xf32>, vector<32x288xf32>, vector<16x288xf32> -> vector<16x288xf32>
      %c16 = arith.constant 16 : index
      %c0_17 = arith.constant 0 : index
      %15 = vector.load %arg6[%c16, %c0_17] : memref<32x288xf32, #tpu.memory_space<vmem>>, vector<16x288xf32>
      tpu.vector_store %arg6[%c16, %c0_17], %14 {strides = array<i32>} : memref<32x288xf32, #tpu.memory_space<vmem>>, vector<16x288xf32>,
    } else {
    }
    %c0 = arith.constant 0 : index
    %c0_1 = arith.constant 0 : index
    %3 = vector.load %arg6[%c0, %c0_1] : memref<32x288xf32, #tpu.memory_space<vmem>>, vector<32x288xf32>
    %c0_2 = arith.constant 0 : index
    %c0_3 = arith.constant 0 : index
    %4 = vector.load %arg4[%c0_2, %c0_3] : memref<288x256xf32, #tpu.memory_space<vmem>>, vector<288x256xf32>
    %cst = arith.constant dense<0.000000e+00> : vector<32x256xf32>
    %5 = tpu.matmul %3, %4, %cst {dimension_numbers = #tpu.dot_dimension_numbers<[1], [0], [0], [1], [0, 0, 1, 1], [], []>} : vector<32x288xf32>, vector<288x256xf32>, vector<32x256xf32> -> vector<32x256xf32>
    %c0_4 = arith.constant 0 : index
    %c0_5 = arith.constant 0 : index
    %6 = vector.load %arg5[%c0_4, %c0_5] : memref<32x256xf32, #tpu.memory_space<vmem>>, vector<32x256xf32>
    tpu.vector_store %arg5[%c0_4, %c0_5], %5 {strides = array<i32>} : memref<32x256xf32, #tpu.memory_space<vmem>>, vector<32x256xf32>,
    return
  }
  func.func @transform_0(%arg0: i32, %arg1: i32) -> (i32, i32, i32) {
    %c0_i32 = arith.constant 0 : i32
    %c0_i32_0 = arith.constant 0 : i32
    %c0_i32_1 = arith.constant 0 : i32
    return %arg0, %c0_i32, %c0_i32_0 : i32, i32, i32
  }
  func.func @transform_1(%arg0: i32, %arg1: i32) -> (i32, i32) {
    %c0_i32 = arith.constant 0 : i32
    %c0_i32_0 = arith.constant 0 : i32
    %c0_i32_1 = arith.constant 0 : i32
    return %c0_i32, %c0_i32_0 : i32, i32
  }
  func.func @transform_2(%arg0: i32, %arg1: i32) -> (i32, i32) {
    %c0_i32 = arith.constant 0 : i32
    %c0_i32_0 = arith.constant 0 : i32
    return %c0_i32, %arg1 : i32, i32
  }
  func.func @transform_3(%arg0: i32, %arg1: i32) -> (i32, i32) {
    %c0_i32 = arith.constant 0 : i32
    return %arg0, %arg1 : i32, i32
  }
}

</mosaic_0001>

<bundles_post_ra>
// kernel: neg.1
= control target key start
LH: loop header
LB: loop body
LE: loop exit
PB: predicated region body
PF: predicated region fallthrough
CT: control target
= control target key end

     0   :  { %s264_s0 = inlined_call_operand.vmem [shape: f32[4,16,144], index: 0, kind: input, shape index: {}]   ;;  %s265_s1 = inlined_call_operand.vmem [shape: f32[4,16,144], index: 1, kind: output, shape index: {}]  }
   0x1   :  { %v2_v0 = vld [vmem:[%s264_s0] sm:$0xff]  ;;  %v134_v7 = vld [vmem:[%s264_s0 + $0x10] sm:$0xff]  ;;  %v142_v14 = vld [vmem:[%s264_s0 + $0x8] sm:$0xff] }
   0x2   :  { %v128_v1 = vld [vmem:[%s264_s0 + $0x20] sm:$0xff]  ;;  %v5_v3 = vxor.u32 2147483648, %v2_v0  ;;  %v136_v8 = vld [vmem:[%s264_s0 + $0x30] sm:$0xff]  ;;  %v36_v10 = vxor.u32 2147483648, %v134_v7  ;;  %v68_v17 = vxor.u32 2147483648, %v142_v14  ;;  %v144_v18 = vld [vmem:[%s264_s0 + $0x28] sm:$0xff] }
   0x3   :  { %v130_v2 = vld [vmem:[%s264_s0 + $0x40] sm:$0xff]  ;;  %v12_v4 = vxor.u32 2147483648, %v128_v1  ;;  %v44_v11 = vxor.u32 2147483648, %v136_v8  ;;  %v138_v12 = vld [vmem:[%s264_s0 + $0x50] sm:$0xff]  ;;  %v146_v19 = vld [vmem:[%s264_s0 + $0x48] sm:$0xff]  ;;  %v76_v21 = vxor.u32 2147483648, %v144_v18 }
   0x4   :  { %v20_v5 = vxor.u32 2147483648, %v130_v2  ;;  %v132_v6 = vld [vmem:[%s264_s0 + $0x60] sm:$0xff]  ;;  %v140_v13 = vld [vmem:[%s264_s0 + $0x70] sm:$0xff]  ;;  %7 = vst [vmem:[%s265_s1] sm:$0xff] %v5_v3  ;;  %v52_v15 = vxor.u32 2147483648, %v138_v12  ;;  %v148_v20 = vld [vmem:[%s264_s0 + $0x68] sm:$0xff]  ;;  %v84_v22 = vxor.u32 2147483648, %v146_v19 }
   0x5   :  { %v28_v9 = vxor.u32 2147483648, %v132_v6  ;;  %129 = vst [vmem:[%s265_s1 + $0x20] sm:$0xff] %v12_v4  ;;  %v60_v16 = vxor.u32 2147483648, %v140_v13  ;;  %135 = vst [vmem:[%s265_s1 + $0x10] sm:$0xff] %v36_v10  ;;  %v92_v23 = vxor.u32 2147483648, %v148_v20  ;;  %v150_v24 = vld [vmem:[%s264_s0 + $0x18] sm:$0xff] }
   0x6   :  { %131 = vst [vmem:[%s265_s1 + $0x40] sm:$0xff] %v20_v5  ;;  %137 = vst [vmem:[%s265_s1 + $0x30] sm:$0xff] %v44_v11  ;;  %v152_v25 = vld [vmem:[%s264_s0 + $0x38] sm:$0xff]  ;;  %v100_v27 = vxor.u32 2147483648, %v150_v24 }
   0x7   :  { %133 = vst [vmem:[%s265_s1 + $0x60] sm:$0xff] %v28_v9  ;;  %v154_v26 = vld [vmem:[%s264_s0 + $0x58] sm:$0xff]  ;;  %139 = vst [vmem:[%s265_s1 + $0x50] sm:$0xff] %v52_v15  ;;  %v108_v28 = vxor.u32 2147483648, %v152_v25 }
   0x8   :  { %141 = vst [vmem:[%s265_s1 + $0x70] sm:$0xff] %v60_v16  ;;  %143 = vst [vmem:[%s265_s1 + $0x8] sm:$0xff] %v68_v17  ;;  %v116_v29 = vxor.u32 2147483648, %v154_v26  ;;  %v156_v30 = vld [vmem:[%s264_s0 + $0x78] sm:$0xff] }
   0x9   :  { %145 = vst [vmem:[%s265_s1 + $0x28] sm:$0xff] %v76_v21  ;;  %147 = vst [vmem:[%s265_s1 + $0x48] sm:$0xff] %v84_v22  ;;  %v124_v31 = vxor.u32 2147483648, %v156_v30 }
   0xa   :  { %149 = vst [vmem:[%s265_s1 + $0x68] sm:$0xff] %v92_v23  ;;  %151 = vst [vmem:[%s265_s1 + $0x18] sm:$0xff] %v100_v27 }
   0xb   :  { %153 = vst [vmem:[%s265_s1 + $0x38] sm:$0xff] %v108_v28  ;;  %155 = vst [vmem:[%s265_s1 + $0x58] sm:$0xff] %v116_v29 }
   0xc   :  { %157 = vst [vmem:[%s265_s1 + $0x78] sm:$0xff] %v124_v31 }

// kernel: ffparser_n_forward.1
= control target key start
LH: loop header
LB: loop body
LE: loop exit
PB: predicated region body
PF: predicated region fallthrough
CT: control target
= control target key end

     0   :  { %s1215_s12 = smov 0   ;;  %s1217_s13 = smov 0   ;;  %s1536_s0 = inlined_call_operand.vmem [shape: f32[4,32,288], index: 0, kind: input, shape index: {}]   ;;  %s1537_s1 = inlined_call_operand.vmem [shape: f32[16,32], index: 1, kind: input, shape index: {}]   ;;  %s1538_s2 = inlined_call_operand.vmem [shape: f32[288,256], index: 2, kind: input, shape index: {}]   ;;  %s1539_s3 = inlined_call_operand.vmem [shape: f32[64,256], index: 3, kind: output, shape index: {}]  }
   0x1   :  { %s1219_s14 = smov 0  }
   0x2 LB: > { %s25_s15 = sadd.s32 1, %s1188_s13  ;;  %p965_p0 = scmp.ge.s32.totalorder %s1192_s14, 1  ;;  %s1192_s14 = sphi %s1219_s14, %s13_s14   ;;  %s1188_s13 = sphi %s1217_s13, %s1541_s13   ;;  %s1184_s12 = sphi %s1215_s12, %s1540_s12  }
   0x3   : > { %p27_p1 = scmp.ge.s32.totalorder %s25_s15, 2  ;;  %p164_p2 = scmp.lt.s32.totalorder %s1192_s14, 3 }
   0x5   : > { %s1543_s15 = smov (%p27_p1, %s25_s15), 0  ;;  %p165_p3 = pnand %p965_p0, %p164_p2 }
   0x6   : > { %s966_s16 = sshll.u32 (!%p165_p3), %s1184_s12, 1  ;;  %v591_v0 = vld [vmem:[%s1538_s2 + $0x8] sm:$0xff] (!%p165_p3)  ;;  %v1194_v1 = vmov (!%p165_p3), 0.0   ;;  %v593_v2 = vld [vmem:[%s1538_s2 + $0x18] sm:$0xff] (!%p165_p3)  ;;  %v590_v3 = vld [vmem:[%s1538_s2] sm:$0xff] (!%p165_p3)  ;;  %vm242_vm0 = vcmask (!%p165_p3), 261120  }
   0x7   : > { %168 = sbr.rel (%p165_p3) target bundleno = 494 (0x1ee), region = 32  ;;  %p200_p4 = scmp.lt.s32.totalorder (!%p165_p3), %s966_s16, 3  ;;  %313 = vmatprep.mubr.f32.mxu0 (!%p165_p3), %v1194_v1  ;;  %v592_v4 = vld [vmem:[%s1538_s2 + $0x10] sm:$0xff] (!%p165_p3)  ;;  %v1064_v5 = vpack.c.bf16 (!%p165_p3), %v593_v2, %v591_v0  ;;  %v595_v7 = vld [vmem:[%s1538_s2 + $0x28] sm:$0xff] (!%p165_p3)  ;;  %v597_v8 = vld [vmem:[%s1538_s2 + $0x38] sm:$0xff] (!%p165_p3) }
   0x8   : > { %v1066_v6 = vpack.c.bf16 (!%p165_p3), %v592_v4, %v590_v3  ;;  %v594_v9 = vld [vmem:[%s1538_s2 + $0x20] sm:$0xff] (!%p165_p3)  ;;  %v1068_v10 = vpack.c.bf16 (!%p165_p3), %v597_v8, %v595_v7  ;;  %v596_v11 = vld [vmem:[%s1538_s2 + $0x30] sm:$0xff] (!%p165_p3)  ;;  %v599_v12 = vld [vmem:[%s1538_s2 + $0x48] sm:$0xff] (!%p165_p3)  ;;  %s968_s6 = sshll.u32 (!%p165_p3), %s1184_s12, 2 }
   0x9   : > { %v601_v13 = vld [vmem:[%s1538_s2 + $0x58] sm:$0xff] (!%p165_p3)  ;;  %1065 = vmatprep.subr.bf16.mxu1 (!%p165_p3), %v1064_v5  ;;  %v1070_v14 = vpack.c.bf16 (!%p165_p3), %v596_v11, %v594_v9  ;;  %v598_v16 = vld [vmem:[%s1538_s2 + $0x40] sm:$0xff] (!%p165_p3)  ;;  %v600_v17 = vld [vmem:[%s1538_s2 + $0x50] sm:$0xff] (!%p165_p3)  ;;  %p214_p5 = scmp.lt.s32.totalorder (!%p165_p3), %s968_s6, 7 }
   0xa   : > { %1067 = vmatpush1.bf16.msra.mxu1 (!%p165_p3), %v1066_v6  ;;  %v1072_v15 = vpack.c.bf16 (!%p165_p3), %v601_v13, %v599_v12  ;;  %v603_v18 = vld [vmem:[%s1538_s2 + $0x68] sm:$0xff] (!%p165_p3)  ;;  %v605_v19 = vld [vmem:[%s1538_s2 + $0x78] sm:$0xff] (!%p165_p3)  ;;  %v602_v23 = vld [vmem:[%s1538_s2 + $0x60] sm:$0xff] (!%p165_p3)  ;;  %v1074_v29 = vpack.c.bf16 (!%p165_p3), %v600_v17, %v598_v16 }
   0xb   : > { %1069 = vmatprep.subr.bf16.mxu1 (!%p165_p3), %v1068_v10  ;;  %v604_v24 = vld [vmem:[%s1538_s2 + $0x70] sm:$0xff] (!%p165_p3)  ;;  %v1076_v35 = vpack.c.bf16 (!%p165_p3), %v605_v19, %v603_v18  ;;  %v607_v37 = vld [vmem:[%s1538_s2 + $0x88] sm:$0xff] (!%p165_p3)  ;;  %v609_v38 = vld [vmem:[%s1538_s2 + $0x98] sm:$0xff] (!%p165_p3) }
   0xc   : > { %v1078_v41 = vpack.c.bf16 (!%p165_p3), %v604_v24, %v602_v23  ;;  %v606_v42 = vld [vmem:[%s1538_s2 + $0x80] sm:$0xff] (!%p165_p3)  ;;  %v1080_v45 = vpack.c.bf16 (!%p165_p3), %v609_v38, %v607_v37  ;;  %v608_v46 = vld [vmem:[%s1538_s2 + $0x90] sm:$0xff] (!%p165_p3)  ;;  %v611_v47 = vld [vmem:[%s1538_s2 + $0xa8] sm:$0xff] (!%p165_p3) }
   0xd   : > { %v613_v48 = vld [vmem:[%s1538_s2 + $0xb8] sm:$0xff] (!%p165_p3)  ;;  %v1323_v49 = vld [vmem:[%s1537_s1] sm:$0xff] (!%p165_p3)  ;;  %v1082_v52 = vpack.c.bf16 (!%p165_p3), %v608_v46, %v606_v42  ;;  %v612_v56 = vld [vmem:[%s1538_s2 + $0xb0] sm:$0xff] (!%p165_p3) }
   0xe   : > { %s1545_s16 = smov (!%p200_p4, %s966_s16), 3  ;;  %1071 = vmatpush1.bf16.msra.mxu1 %v1070_v14  ;;  %v1084_v54 = vpack.c.bf16 %v613_v48, %v611_v47  ;;  %v610_v55 = vld [vmem:[%s1538_s2 + $0xa0] sm:$0xff]  ;;  %v615_v57 = vld [vmem:[%s1538_s2 + $0xc8] sm:$0xff]  ;;  %v617_v58 = vld [vmem:[%s1538_s2 + $0xd8] sm:$0xff]  ;;  %s1547_s6 = smov (!%p214_p5, %s968_s6), 7 }
   0xf   : > { %s1144_s10 = smul.u32 96, %s1545_s16  ;;  %1073 = vmatprep.subr.bf16.mxu1 %v1072_v15  ;;  %v1345_v59 = vld [vmem:[%s1537_s1 + $0x8] sm:$0xff]  ;;  %v1086_v0 = vpack.c.bf16 %v612_v56, %v610_v55  ;;  %v1088_v3 = vpack.c.bf16 %v617_v58, %v615_v57  ;;  %v614_v4 = vld [vmem:[%s1538_s2 + $0xc0] sm:$0xff]  ;;  %v616_v5 = vld [vmem:[%s1538_s2 + $0xd0] sm:$0xff] }
  0x10   : > { %v619_v6 = vld [vmem:[%s1538_s2 + $0xe8] sm:$0xff]  ;;  %v621_v7 = vld [vmem:[%s1538_s2 + $0xf8] sm:$0xff]  ;;  %v1090_v13 = vpack.c.bf16 %v616_v5, %v614_v4  ;;  %v618_v16 = vld [vmem:[%s1538_s2 + $0xe0] sm:$0xff] }
  0x11   : > { %s1276_s22 = scalar_lea.vmem %s1536_s0, %s1144_s10  ;;  %v1092_v15 = vpack.c.bf16 %v621_v7, %v619_v6  ;;  %v620_v17 = vld [vmem:[%s1538_s2 + $0xf0] sm:$0xff]  ;;  %v623_v18 = vld [vmem:[%s1538_s2 + $0x108] sm:$0xff]  ;;  %v625_v19 = vld [vmem:[%s1538_s2 + $0x118] sm:$0xff] }
  0x12   : > { %v231_v20 = vld [vmem:[%s1276_s22 + $0x8] sm:$0xff]  ;;  %v234_v21 = vld [vmem:[%s1276_s22 + $0x20] sm:$0xff]  ;;  %v233_v26 = vld [vmem:[%s1276_s22 + $0x18] sm:$0xff]  ;;  %1075 = vmatpush1.bf16.msra.mxu1 %v1074_v29  ;;  %v1094_v23 = vpack.c.bf16 %v620_v17, %v618_v16 }
  0x13   : > { %v230_v22 = vld [vmem:[%s1276_s22] sm:$0xff]  ;;  %v1032_v25 = vpack.c.bf16 %v234_v21, %v231_v20  ;;  %v237_v27 = vld [vmem:[%s1276_s22 + $0x38] sm:$0xff]  ;;  %v240_v28 = vld [vmem:[%s1276_s22 + $0x50] sm:$0xff]  ;;  %1077 = vmatprep.subr.bf16.mxu1 %v1076_v35 }
  0x14   : > { %v1034_v30 = vpack.c.bf16 %v233_v26, %v230_v22  ;;  %v1036_v31 = vpack.c.bf16 %v240_v28, %v237_v27  ;;  %v236_v32 = vld [vmem:[%s1276_s22 + $0x30] sm:$0xff]  ;;  %v239_v33 = vld [vmem:[%s1276_s22 + $0x48] sm:$0xff]  ;;  %v238_v43 = vld [vmem:[%s1276_s22 + $0x40] sm:$0xff] }
  0x15   : > { %v232_v34 = vld [vmem:[%s1276_s22 + $0x10] sm:$0xff]  ;;  %1033 = vmatprep.subr.bf16.mxu0 %v1032_v25  ;;  %v235_v36 = vld [vmem:[%s1276_s22 + $0x28] sm:$0xff]  ;;  %v1038_v39 = vpack.c.bf16 %v239_v33, %v236_v32  ;;  %v241_v44 = vld [vmem:[%s1276_s22 + $0x58] sm:$0xff]  ;;  %v1096_v25 = vpack.c.bf16 %v625_v19, %v623_v18 }
  0x16   : > { %1035 = vmatpush1.bf16.msra.mxu0 %v1034_v30  ;;  %v1040_v40 = vpack.c.bf16 %v235_v36, %v232_v34  ;;  %v1044_v50 = vpack.c.bf16 %v241_v44, %v238_v43  ;;  %v976_v51 = vld [vmem:[%s1276_s22 + $0x68] sm:$0xff]  ;;  %1079 = vmatpush1.bf16.msra.mxu1 %v1078_v41  ;;  %v979_v53 = vld [vmem:[%s1276_s22 + $0x80] sm:$0xff]  ;;  %v978_v62 = vld [vmem:[%s1276_s22 + $0x78] sm:$0xff] }
  0x17   : > { %1037 = vmatprep.subr.bf16.mxu0 %v1036_v31  ;;  %1081 = vmatprep.subr.bf16.mxu1 %v1080_v45  ;;  %v1048_v60 = vpack.c.bf16 %v979_v53, %v976_v51  ;;  %v975_v61 = vld [vmem:[%s1276_s22 + $0x60] sm:$0xff]  ;;  %v982_v63 = vld [vmem:[%s1276_s22 + $0x98] sm:$0xff]  ;;  %v985_v2 = vld [vmem:[%s1276_s22 + $0xb0] sm:$0xff] }
  0x18   : > { %v1050_v8 = vpack.c.bf16 %v978_v62, %v975_v61  ;;  %v1052_v9 = vpack.c.bf16 %v985_v2, %v982_v63  ;;  %v981_v10 = vld [vmem:[%s1276_s22 + $0x90] sm:$0xff]  ;;  %v984_v11 = vld [vmem:[%s1276_s22 + $0xa8] sm:$0xff]  ;;  %v983_v22 = vld [vmem:[%s1276_s22 + $0xa0] sm:$0xff] }
  0x19   : > { %v977_v12 = vld [vmem:[%s1276_s22 + $0x70] sm:$0xff]  ;;  %v980_v14 = vld [vmem:[%s1276_s22 + $0x88] sm:$0xff]  ;;  %v1054_v20 = vpack.c.bf16 %v984_v11, %v981_v10  ;;  %v986_v24 = vld [vmem:[%s1276_s22 + $0xb8] sm:$0xff]  ;;  %s997_s22 = sshll.u32 %s1547_s6, 4 }
  0x1a   : > { %1039 = vmatpush1.bf16.msra.mxu0 %v1038_v39  ;;  %1083 = vmatpush1.bf16.msra.mxu1 %v1082_v52  ;;  %v1056_v21 = vpack.c.bf16 %v980_v14, %v977_v12  ;;  %v622_v26 = vld [vmem:[%s1538_s2 + $0x100] sm:$0xff]  ;;  %v624_v27 = vld [vmem:[%s1538_s2 + $0x110] sm:$0xff]  ;;  %v627_v28 = vld [vmem:[%s1538_s2 + $0x128] sm:$0xff]  ;;  %v1060_v30 = vpack.c.bf16 %v986_v24, %v983_v22  ;;  %s221_s9 = scalar_lea.vmem %s1539_s3, %s997_s22 }
  0x1b   : > { %1041 = vmatprep.subr.bf16.mxu0 %v1040_v40  ;;  %1085 = vmatprep.subr.bf16.mxu1 %v1084_v54  ;;  %v629_v29 = vld [vmem:[%s1538_s2 + $0x138] sm:$0xff]  ;;  %v1098_v31 = vpack.c.bf16 %v624_v27, %v622_v26  ;;  %v626_v33 = vld [vmem:[%s1538_s2 + $0x120] sm:$0xff]  ;;  %v628_v34 = vld [vmem:[%s1538_s2 + $0x130] sm:$0xff] }
  0x1c   : > { %v1100_v32 = vpack.c.bf16 %v629_v29, %v627_v28  ;;  %v631_v35 = vld [vmem:[%s1538_s2 + $0x148] sm:$0xff]  ;;  %v633_v36 = vld [vmem:[%s1538_s2 + $0x158] sm:$0xff]  ;;  %v1102_v37 = vpack.c.bf16 %v628_v34, %v626_v33  ;;  %v630_v39 = vld [vmem:[%s1538_s2 + $0x140] sm:$0xff] }
  0x1d   : > { %971 = vmatmul.mubr.msk.f32.vlgmr.msra.gmra.mrb[0].mxu0 %vm242_vm0, %v1323_v49  ;;  %v1104_v38 = vpack.c.bf16 %v633_v36, %v631_v35  ;;  %v635_v41 = vld [vmem:[%s1538_s2 + $0x168] sm:$0xff]  ;;  %v637_v42 = vld [vmem:[%s1538_s2 + $0x178] sm:$0xff]  ;;  %v634_v45 = vld [vmem:[%s1538_s2 + $0x160] sm:$0xff] }
  0x1e   : > { %1043 = vmatpush3.bf16.msra.mxu0 %v1040_v40  ;;  %319 = vmatprep.mubr.f32.mxu0 %v1194_v1  ;;  %v632_v40 = vld [vmem:[%s1538_s2 + $0x150] sm:$0xff]  ;;  %v1108_v44 = vpack.c.bf16 %v637_v42, %v635_v41  ;;  %v639_v47 = vld [vmem:[%s1538_s2 + $0x188] sm:$0xff]  ;;  %v641_v48 = vld [vmem:[%s1538_s2 + $0x198] sm:$0xff] }
  0x1f   : > { %1045 = vmatprep.subr.bf16.mxu0 %v1044_v50  ;;  %1087 = vmatpush1.bf16.msra.mxu1 %v1086_v0  ;;  %v1106_v43 = vpack.c.bf16 %v632_v40, %v630_v39  ;;  %v636_v46 = vld [vmem:[%s1538_s2 + $0x170] sm:$0xff]  ;;  %v638_v51 = vld [vmem:[%s1538_s2 + $0x180] sm:$0xff]  ;;  %v643_v53 = vld [vmem:[%s1538_s2 + $0x1a8] sm:$0xff] }
  0x20   : > { %1089 = vmatprep.subr.bf16.mxu1 %v1088_v3  ;;  %v640_v52 = vld [vmem:[%s1538_s2 + $0x190] sm:$0xff]  ;;  %v645_v54 = vld [vmem:[%s1538_s2 + $0x1b8] sm:$0xff]  ;;  %v642_v57 = vld [vmem:[%s1538_s2 + $0x1a0] sm:$0xff] }
  0x21   : > { %972 = vmatmul.mubr.msk.f32.gmra.mrb[2].mxu0 %vm242_vm0, %v1345_v59  ;;  %v1114_v55 = vpack.c.bf16 %v640_v52, %v638_v51  ;;  %v1116_v56 = vpack.c.bf16 %v645_v54, %v643_v53  ;;  %v644_v58 = vld [vmem:[%s1538_s2 + $0x1b0] sm:$0xff]  ;;  %v649_v61 = vld [vmem:[%s1538_s2 + $0x1d8] sm:$0xff]  ;;  %v646_v63 = vld [vmem:[%s1538_s2 + $0x1c0] sm:$0xff] }
  0x22   : > { %1047 = vmatpush3.bf16.msra.mxu0 %v1044_v50  ;;  %1018 = vmatprep.mubr.msk.f32.mxu0 %vm242_vm0, %v1323_v49  ;;  %v1112_v50 = vpack.c.bf16 %v641_v48, %v639_v47  ;;  %v648_v0 = vld [vmem:[%s1538_s2 + $0x1d0] sm:$0xff]  ;;  %v651_v3 = vld [vmem:[%s1538_s2 + $0x1e8] sm:$0xff]  ;;  %v653_v4 = vld [vmem:[%s1538_s2 + $0x1f8] sm:$0xff] }
  0x23   : > { %1049 = vmatprep.subr.bf16.mxu0 %v1048_v60  ;;  %1091 = vmatpush1.bf16.msra.mxu1 %v1090_v13  ;;  %v647_v60 = vld [vmem:[%s1538_s2 + $0x1c8] sm:$0xff]  ;;  %v1122_v2 = vpack.c.bf16 %v648_v0, %v646_v63  ;;  %v1124_v5 = vpack.c.bf16 %v653_v4, %v651_v3  ;;  %v650_v6 = vld [vmem:[%s1538_s2 + $0x1e0] sm:$0xff]  ;;  %v652_v7 = vld [vmem:[%s1538_s2 + $0x1f0] sm:$0xff] }
  0x24   : > { %1093 = vmatprep.subr.bf16.mxu1 %v1092_v15  ;;  %v1120_v62 = vpack.c.bf16 %v649_v61, %v647_v60  ;;  %v657_v10 = vld [vmem:[%s1538_s2 + $0x218] sm:$0xff]  ;;  %v654_v12 = vld [vmem:[%s1538_s2 + $0x200] sm:$0xff]  ;;  %v656_v13 = vld [vmem:[%s1538_s2 + $0x210] sm:$0xff] }
  0x25   : > { %1019 = vmatmul.mubr.msk.f32.vlgmr.msra.gmra.mrb[4].mxu0 %vm242_vm0, %v1345_v59  ;;  %v1130_v14 = vpack.c.bf16 %v656_v13, %v654_v12  ;;  %v659_v15 = vld [vmem:[%s1538_s2 + $0x228] sm:$0xff]  ;;  %v661_v16 = vld [vmem:[%s1538_s2 + $0x238] sm:$0xff]  ;;  %v658_v17 = vld [vmem:[%s1538_s2 + $0x220] sm:$0xff] }
  0x26   : > { %1051 = vmatpush1.bf16.msra.mxu0 %v1050_v8  ;;  %484 = vmatprep.mubr.f32.mxu0 %v1194_v1  ;;  %v1126_v8 = vpack.c.bf16 %v652_v7, %v650_v6  ;;  %v1132_v18 = vpack.c.bf16 %v661_v16, %v659_v15  ;;  %v660_v19 = vld [vmem:[%s1538_s2 + $0x230] sm:$0xff] }
  0x27   : > { %1053 = vmatprep.subr.bf16.mxu0 %v1052_v9  ;;  %1095 = vmatpush1.bf16.msra.mxu1 %v1094_v23  ;;  %v655_v9 = vld [vmem:[%s1538_s2 + $0x208] sm:$0xff] }
  0x28   : > { %1097 = vmatprep.subr.bf16.mxu1 %v1096_v25  ;;  %v1128_v11 = vpack.c.bf16 %v657_v10, %v655_v9 }
  0x2a   : > { %1055 = vmatpush1.bf16.msra.mxu0 %v1054_v20  ;;  %v1134_v20 = vpack.c.bf16 %v660_v19, %v658_v17 }
  0x2b   : > { %1057 = vmatprep.subr.bf16.mxu0 %v1056_v21  ;;  %1099 = vmatpush1.bf16.msra.mxu1 %v1098_v31 }
  0x2c   : > { %1101 = vmatprep.subr.bf16.mxu1 %v1100_v32 }
  0x2d   : > { %987 = vmatmul.mubr.msk.f32.vlgmr.msra.gmra.mrb[6].mxu0 %vm242_vm0, %v1323_v49 }
  0x2e   : > { %1059 = vmatpush3.bf16.msra.mxu0 %v1056_v21  ;;  %490 = vmatprep.mubr.f32.mxu0 %v1194_v1 }
  0x2f   : > { %1061 = vmatprep.subr.bf16.mxu0 %v1060_v30  ;;  %1103 = vmatpush1.bf16.msra.mxu1 %v1102_v37 }
  0x30   : > { %1105 = vmatprep.subr.bf16.mxu1 %v1104_v38 }
  0x31   : > { %988 = vmatmul.mubr.msk.f32.gmra.mrb[8].mxu0 %vm242_vm0, %v1345_v59 }
  0x32   : > { %1063 = vmatpush3.bf16.msra.mxu0 %v1060_v30  ;;  %1029 = vmatprep.mubr.msk.f32.mxu0 %vm242_vm0, %v1323_v49  ;;  %v1110_v49 = vpack.c.bf16 %v636_v46, %v634_v45 }
  0x33   : > { %1107 = vmatpush1.bf16.msra.mxu1 %v1106_v43  ;;  %1129 = vmatprep.subr.bf16.mxu0 %v1128_v11 }
  0x34   : > { %1109 = vmatprep.subr.bf16.mxu1 %v1108_v44 }
  0x35   : > { %1030 = vmatmul.mubr.msk.f32.vlgmr.msra.gmra.mrb[10].mxu0 %vm242_vm0, %v1345_v59  ;;  %v1118_v59 = vpack.c.bf16 %v644_v58, %v642_v57 }
  0x36   : > { %828 = vmatprep.mubr.f32.mxu0 %v1194_v1  ;;  %1131 = vmatpush1.bf16.msra.mxu0 %v1130_v14 }
  0x37   : > { %1111 = vmatpush1.bf16.msra.mxu1 %v1110_v49  ;;  %1133 = vmatprep.subr.bf16.mxu0 %v1132_v18 }
  0x38   : > { %1113 = vmatprep.subr.bf16.mxu1 %v1112_v50 }
  0x3a   : > { %1135 = vmatpush1.bf16.msra.mxu0 %v1134_v20 }
  0x3b   : > { %1115 = vmatpush1.bf16.msra.mxu1 %v1114_v55 }
  0x3c   : > { %1117 = vmatprep.subr.bf16.mxu1 %v1116_v56 }
  0x3f   : > { %1119 = vmatpush1.bf16.msra.mxu1 %v1118_v59 }
  0x40   : > { %1121 = vmatprep.subr.bf16.mxu1 %v1120_v62 }
  0x43   : > { %1123 = vmatpush1.bf16.msra.mxu1 %v1122_v2 }
  0x44   : > { %1125 = vmatprep.subr.bf16.mxu1 %v1124_v5 }
  0x47   : > { %1127 = vmatpush1.bf16.msra.mxu1 %v1126_v8 }
  0xf0   : > { %v315_v21 = vpop.f32.mrb[0].mxu0 }
  0xf1   : > { %v317_v22 = vpop.f32.mrb[1].mxu0 }
  0xf2   : > { %739 = vmatprep.mubr.f32.mxu1 %v317_v22 }
  0xf3   : > { %740 = vmatmul.mubr.f32.vlgmr.msra.gmra.mrb[0].mxu1 %v315_v21 }
  0xf4   : > { %v321_v23 = vpop.f32.mrb[2].mxu0 }
  0xf5   : > { %v323_v24 = vpop.f32.mrb[3].mxu0 }
  0xf6   : > { %745 = vmatprep.mubr.f32.mxu1 %v323_v24 }
  0xf7   : > { %746 = vmatmul.mubr.f32.gmra.mrb[2].mxu1 %v321_v23 }
  0xf8   : > { %v1020_v25 = vpop.f32.mrb[4].mxu0 }
  0xf9   : > { %406 = vst.msk [vmem:[#allocation2 + $0x28] sm:$0xff] %vm242_vm0, %v1020_v25  ;;  %v392_v26 = vpop.f32.mrb[5].mxu0 }
  0xfa   : > { %403 = vst.msk [vmem:[#allocation2 + $0x10] sm:$0xff] %vm242_vm0, %v392_v26 }
 0x100   : > { %v486_v27 = vpop.f32.mrb[6].mxu0  ;;  %v583_v32 = vld [vmem:[#allocation2 + $0x28] sm:$0xff] }
 0x101   : > { %v488_v28 = vpop.f32.mrb[7].mxu0  ;;  %v580_v29 = vld [vmem:[#allocation2 + $0x10] sm:$0xff] }
 0x102   : > { %991 = vmatmul.mubr.msk.f32.vlgmr.msra.gmra.mrb[12].mxu0 %vm242_vm0, %v580_v29  ;;  %751 = vmatprep.mubr.f32.mxu1 %v488_v28 }
 0x103   : > { %834 = vmatprep.mubr.f32.mxu0 %v1194_v1  ;;  %752 = vmatmul.mubr.f32.gmra.mrb[4].mxu1 %v486_v27 }
 0x104   : > { %v492_v30 = vpop.f32.mrb[8].mxu0 }
 0x105   : > { %v494_v31 = vpop.f32.mrb[9].mxu0 }
 0x106   : > { %992 = vmatmul.mubr.msk.f32.gmra.mrb[14].mxu0 %vm242_vm0, %v583_v32  ;;  %757 = vmatprep.mubr.f32.mxu1 %v494_v31 }
 0x107   : > { %758 = vmatmul.mubr.f32.gmra.mrb[6].mxu1 %v492_v30  ;;  %840 = vmatprep.mubr.f32.mxu0 %v1194_v1 }
 0x108   : > { %v1031_v33 = vpop.f32.mrb[10].mxu0 }
 0x109   : > { %577 = vst.msk [vmem:[#allocation2 + $0x58] sm:$0xff] %vm242_vm0, %v1031_v33  ;;  %v563_v34 = vpop.f32.mrb[11].mxu0 }
 0x10a   : > { %574 = vst.msk [vmem:[#allocation2 + $0x40] sm:$0xff] %vm242_vm0, %v563_v34 }
 0x110   : > { %v589_v36 = vld [vmem:[#allocation2 + $0x58] sm:$0xff] }
 0x111   : > { %v586_v35 = vld [vmem:[#allocation2 + $0x40] sm:$0xff] }
 0x112   : > { %993 = vmatmul.mubr.msk.f32.gmra.mrb[16].mxu0 %vm242_vm0, %v586_v35 }
 0x113   : > { %846 = vmatprep.mubr.f32.mxu0 %v1194_v1 }
 0x116   : > { %994 = vmatmul.mubr.msk.f32.gmra.mrb[18].mxu0 %vm242_vm0, %v589_v36 }
 0x1c6   : > { %v741_v37 = vpop.f32.mrb[0].mxu1 }
 0x1c7   : > { %v743_v38 = vpop.f32.mrb[1].mxu1 }
 0x1ca   : > { %v747_v39 = vpop.f32.mrb[2].mxu1 }
 0x1cb   : > { %v749_v40 = vpop.f32.mrb[3].mxu1 }
 0x1d5   : > { %v830_v41 = vpop.f32.mrb[12].mxu0 }
 0x1d6   : > { %v831_v42 = vadd.f32 %v830_v41, %v741_v37  ;;  %v832_v43 = vpop.f32.mrb[13].mxu0  ;;  %v753_v44 = vpop.f32.mrb[4].mxu1 }
 0x1d7   : > { %v833_v1 = vadd.f32 %v832_v43, %v743_v38  ;;  %v755_v45 = vpop.f32.mrb[5].mxu1 }
 0x1d8   : > { %853 = vst [vmem:[%s221_s9] sm:$0xff] %v831_v42 }
 0x1d9   : > { %854 = vst [vmem:[%s221_s9 + $0x8] sm:$0xff] %v833_v1  ;;  %v836_v46 = vpop.f32.mrb[14].mxu0 }
 0x1da   : > { %v837_v47 = vadd.f32 %v836_v46, %v747_v39  ;;  %v838_v48 = vpop.f32.mrb[15].mxu0  ;;  %v759_v49 = vpop.f32.mrb[6].mxu1 }
 0x1db   : > { %v839_v50 = vadd.f32 %v838_v48, %v749_v40  ;;  %v761_v51 = vpop.f32.mrb[7].mxu1 }
 0x1dc   : > { %855 = vst [vmem:[%s221_s9 + $0x10] sm:$0xff] %v837_v47 }
 0x1dd   : > { %856 = vst [vmem:[%s221_s9 + $0x18] sm:$0xff] %v839_v50 }
 0x1e5   : > { %v842_v52 = vpop.f32.mrb[16].mxu0 }
 0x1e6   : > { %v843_v53 = vadd.f32 %v842_v52, %v753_v44  ;;  %v844_v54 = vpop.f32.mrb[17].mxu0 }
 0x1e7   : > { %v845_v55 = vadd.f32 %v844_v54, %v755_v45 }
 0x1e8   : > { %857 = vst [vmem:[%s221_s9 + $0x20] sm:$0xff] %v843_v53 }
 0x1e9   : > { %858 = vst [vmem:[%s221_s9 + $0x28] sm:$0xff] %v845_v55  ;;  %v848_v56 = vpop.f32.mrb[18].mxu0 }
 0x1ea   : > { %v849_v57 = vadd.f32 %v848_v56, %v759_v49  ;;  %v850_v58 = vpop.f32.mrb[19].mxu0 }
 0x1eb   : > { %v851_v59 = vadd.f32 %v850_v58, %v761_v51 }
 0x1ec   : > { %859 = vst [vmem:[%s221_s9 + $0x30] sm:$0xff] %v849_v57 }
 0x1ed   : > { %860 = vst [vmem:[%s221_s9 + $0x38] sm:$0xff] %v851_v59 }
 0x1ee PF: > { %s13_s14 = sadd.s32 1, %s1192_s14   ;;  %s1540_s12 = smov %s1188_s13 }
 0x1ef   : > { %p10_p6 = scmp.ge.s32.totalorder %s13_s14, 4   ;;  %s1541_s13 = smov %s1543_s15 }
 0x1f1   :  { %12 = sbr.rel (!%p10_p6) target bundleno = 2 (0x2), region = 70 }

</bundles_post_ra>
